<compile_context>
chip_gen: v6e
topology: v6e:2x2x1
jax: 0.10.0
libtpu: 0.0.40
codegen_flags: <defaults>
</compile_context>

<pallas_src>
from functools import reduce as _reduce

import jax
import jax.numpy as jnp
from jax.experimental import pallas as pl
from jax.experimental.pallas import tpu as pltpu

_LANE = 128
_BP = 8  # batch rows padded to one sublane tile


def recurrent_nn_forward(x, params, out_dim):
    """x: [B, S, D_in] float32 -> [B, S, *out_dim] float32."""
    B, S, D_in = x.shape
    W_e, b_e = params["W_emb"], params["b_emb"]
    W_ih, b_ih = params["W_ih"], params["b_ih"]
    W_hh, b_hh = params["W_hh"], params["b_hh"]
    W_h, b_h = params["W_head"], params["b_head"]
    E = W_e.shape[0]
    H = W_hh.shape[1]
    P = W_h.shape[0]
    assert B <= _BP and max(D_in, E, 3 * H, P) <= _LANE, "fixed small-config kernel"

    # ---- pack every weight/bias into ONE lane-dense [rows, 128] slab (1 DMA) ----
    def _align8(r):
        return (r + 7) & ~7

    R_WE = 0
    R_WIH = _align8(R_WE + D_in)
    R_WHH = _align8(R_WIH + E)
    R_WH = _align8(R_WHH + H)
    R_BE = _align8(R_WH + H)
    R_BIH, R_BHH, R_BH = R_BE + 1, R_BE + 2, R_BE + 3
    rows = _align8(R_BH + 1)

    slab = jnp.zeros((rows, _LANE), jnp.float32)
    slab = slab.at[R_WE:R_WE + D_in, :E].set(W_e.T)          # [D_in, E]
    slab = slab.at[R_WIH:R_WIH + E, :3 * H].set(W_ih.T)      # [E, 3H]
    slab = slab.at[R_WHH:R_WHH + H, :3 * H].set(W_hh.T)      # [H, 3H]
    slab = slab.at[R_WH:R_WH + H, :P].set(W_h.T)             # [H, P]
    slab = slab.at[R_BE, :E].set(b_e)
    slab = slab.at[R_BIH, :3 * H].set(b_ih)
    slab = slab.at[R_BHH, :3 * H].set(b_hh)
    slab = slab.at[R_BH, :P].set(b_h)

    # ---- time-major, batch padded to a full sublane tile, flattened to 2-D ----
    x_tm = jnp.transpose(x, (1, 0, 2))                       # [S, B, D_in]
    x_tm = jnp.pad(x_tm, ((0, 0), (0, _BP - B), (0, 0)))     # [S, BP, D_in] (zero rows)
    x_tm = x_tm.reshape(S * _BP, D_in)

    def kernel(x_ref, slab_ref, o_ref):
        # Static, sublane-aligned slices of the single weight slab.
        weT = slab_ref[R_WE:R_WE + D_in, 0:E]                # [D_in, E]
        wihT = slab_ref[R_WIH:R_WIH + E, 0:3 * H]            # [E, 3H]
        whhT = slab_ref[R_WHH:R_WHH + H, 0:3 * H]            # [H, 3H]
        whT = slab_ref[R_WH:R_WH + H, 0:P]                   # [H, P]
        be = slab_ref[R_BE:R_BE + 1, 0:E]                    # [1, E]
        bih = slab_ref[R_BIH:R_BIH + 1, 0:3 * H]             # [1, 3H]
        bhh = slab_ref[R_BHH:R_BHH + 1, 0:3 * H]             # [1, 3H]
        bh = slab_ref[R_BH:R_BH + 1, 0:P]                    # [1, P]

        # ---- hoisted, time-parallel work (single batched MXU ops) ----
        # TODO(synk): on v6e/v7x, bf16-cast x/weT/wihT/whT feeds (f32 accumulate) once
        # E/H grow; kept f32 here to preserve tight tolerance (v5e has no bf16 VPU/EUP).
        emb = jnp.tanh(
            jnp.dot(x_ref[...], weT, preferred_element_type=jnp.float32) + be)
        gx_all = jnp.dot(emb, wihT, preferred_element_type=jnp.float32) + bih

        bhh_b = jnp.broadcast_to(bhh, (_BP, 3 * H))          # hoisted broadcast

        def sigm(v):                                         # single-EUP sigmoid
            return 0.5 * (jnp.tanh(0.5 * v) + 1.0)

        # ---- sequential GRU recurrence (PyTorch gate order: r, z, n) ----
        h = jnp.zeros((_BP, H), jnp.float32)                 # h0 = 0
        hs = []                                              # register-resident history
        for t in range(S):                                   # static unroll (S small)
            gx = gx_all[t * _BP:(t + 1) * _BP, :]            # [BP, 3H], full-sublane slice
            gh = jnp.dot(h, whhT, preferred_element_type=jnp.float32) + bhh_b
            gs = gx + gh                                     # fused gate pre-activation
            r = sigm(gs[:, :H])
            z = sigm(gs[:, H:2 * H])
            n = jnp.tanh(gx[:, 2 * H:] + r * gh[:, 2 * H:])
            h = (1.0 - z) * n + z * h
            hs.append(h)

        # ---- head: one batched matmul + single output store ----
        h_all = jnp.concatenate(hs, axis=0)                  # [S*BP, H], no VMEM scratch
        o_ref[...] = jnp.dot(h_all, whT, preferred_element_type=jnp.float32) + bh

    def full_spec(shape):
        return pl.BlockSpec(shape, lambda i, _n=len(shape): (0,) * _n)

    out = pl.pallas_call(
        kernel,
        out_shape=jax.ShapeDtypeStruct((S * _BP, P), jnp.float32),
        grid_spec=pltpu.PrefetchScalarGridSpec(
            num_scalar_prefetch=0,
            grid=(1,),                                       # single invocation
            in_specs=[
                full_spec((S * _BP, D_in)),                  # x, all timesteps
                full_spec((rows, _LANE)),                    # packed weight slab
            ],
            out_specs=full_spec((S * _BP, P)),
        ),
        compiler_params=pltpu.CompilerParams(
            dimension_semantics=("arbitrary",)),             # recurrence: sequential
        # TODO(synk): add a leading "parallel" batch-tile axis for v7x's 2nd TensorCore
        # only once per-core rows reach >= a sublane tile (ideally >= 256 for the MXU).
    )(x_tm, slab)

    out = out.reshape(S, _BP, P)[:, :B, :]                   # drop padded batch rows
    out = out.transpose(1, 0, 2)                             # [B, S, P]
    return out.reshape(out.shape[:-1] + tuple(out_dim))


def reference_forward(x, params, out_dim):
    """Pure-JAX reference matching PyTorch semantics (for validation)."""
    W_e, b_e = params["W_emb"], params["b_emb"]
    W_ih, b_ih = params["W_ih"], params["b_ih"]
    W_hh, b_hh = params["W_hh"], params["b_hh"]
    W_h, b_h = params["W_head"], params["b_head"]
    B, S, _ = x.shape
    H = W_hh.shape[1]

    emb = jnp.tanh(x @ W_e.T + b_e)                          # [B, S, E]

    def step(h, x_t):
        gx = x_t @ W_ih.T + b_ih
        gh = h @ W_hh.T + b_hh
        r = jax.nn.sigmoid(gx[:, :H] + gh[:, :H])
        z = jax.nn.sigmoid(gx[:, H:2 * H] + gh[:, H:2 * H])
        n = jnp.tanh(gx[:, 2 * H:] + r * gh[:, 2 * H:])
        h_new = (1.0 - z) * n + z * h
        return h_new, h_new

    h0 = jnp.zeros((B, H), jnp.float32)
    _, hs = jax.lax.scan(step, h0, jnp.transpose(emb, (1, 0, 2)))
    hs = jnp.transpose(hs, (1, 0, 2))                        # [B, S, H]
    out = hs @ W_h.T + b_h
    return out.reshape(out.shape[:-1] + tuple(out_dim))


def init_params(key, in_dim, emb_dim, hidden, out_dim):
    """Deterministic synthetic parameter init (matches shapes of the PyTorch module)."""
    out_features = _reduce(lambda a, b: a * b, list(out_dim))
    ks = jax.random.split(key, 8)
    s = 0.1
    return {
        # embedding Linear(in_dim -> emb_dim) + Tanh
        "W_emb": s * jax.random.normal(ks[0], (emb_dim, in_dim), jnp.float32),
        "b_emb": s * jax.random.normal(ks[1], (emb_dim,), jnp.float32),
        # GRU(input_size=emb_dim, hidden_size=hidden, num_layers=1, batch_first=True)
        "W_ih": s * jax.random.normal(ks[2], (3 * hidden, emb_dim), jnp.float32),
        "b_ih": s * jax.random.normal(ks[3], (3 * hidden,), jnp.float32),
        "W_hh": s * jax.random.normal(ks[4], (3 * hidden, hidden), jnp.float32),
        "b_hh": s * jax.random.normal(ks[5], (3 * hidden,), jnp.float32),
        # head Linear(hidden -> prod(out_dim), bias=True)
        "W_head": s * jax.random.normal(ks[6], (out_features, hidden), jnp.float32),
        "b_head": s * jax.random.normal(ks[7], (out_features,), jnp.float32),
    }


if __name__ == "__main__":
    # Module config: in_dim=(16,), out_dim=(4,), embedding_layers=(32,), layers=(32,),
    # non_linearity='Tanh', biased_head=True, squashed_output=False.
    B, S, D_IN, EMB, HID = 2, 8, 16, 32, 32
    OUT_DIM = (4,)

    key = jax.random.PRNGKey(0)
    k_x, k_p = jax.random.split(key)
    x = jax.random.normal(k_x, (B, S, D_IN), jnp.float32)
    params = init_params(k_p, D_IN, EMB, HID, OUT_DIM)

    y = recurrent_nn_forward(x, params, OUT_DIM)
    y = jax.block_until_ready(y)

    y_ref = reference_forward(x, params, OUT_DIM)
    assert y.shape == (B, S) + OUT_DIM, y.shape
    assert jnp.allclose(y, y_ref, atol=1e-4, rtol=1e-4), "mismatch vs pure-JAX reference"

    print("KERNEL_OK")
</pallas_src>

<mosaic_0001>
module attributes {stable_mosaic.version = 11 : i64} {
  func.func @kernel(%arg0: i32, %arg1: memref<64x16xf32, #tpu.memory_space<vmem>>, %arg2: memref<120x128xf32, #tpu.memory_space<vmem>>, %arg3: memref<64x4xf32, #tpu.memory_space<vmem>>) attributes {dimension_semantics = [#tpu.dimension_semantics<arbitrary>], iteration_bounds = array<i64: 1>, scalar_prefetch = 0 : i64, scratch_operands = 0 : i64, tpu.core_type = #tpu.core_type<tc>, window_params = [{pipeline_mode = #tpu.pipeline_mode<synchronous>, transform_indices = @transform_0, window_bounds = array<i64: 64, 16>}, {pipeline_mode = #tpu.pipeline_mode<synchronous>, transform_indices = @transform_1, window_bounds = array<i64: 120, 128>}, {pipeline_mode = #tpu.pipeline_mode<synchronous>, transform_indices = @transform_2, window_bounds = array<i64: 64, 4>}]} {
    %c0 = arith.constant 0 : index
    %c0_0 = arith.constant 0 : index
    %0 = vector.load %arg2[%c0, %c0_0] : memref<120x128xf32, #tpu.memory_space<vmem>>, vector<16x32xf32>
    %c16 = arith.constant 16 : index
    %c0_1 = arith.constant 0 : index
    %1 = vector.load %arg2[%c16, %c0_1] : memref<120x128xf32, #tpu.memory_space<vmem>>, vector<32x96xf32>
    %c48 = arith.constant 48 : index
    %c0_2 = arith.constant 0 : index
    %2 = vector.load %arg2[%c48, %c0_2] : memref<120x128xf32, #tpu.memory_space<vmem>>, vector<32x96xf32>
    %c80 = arith.constant 80 : index
    %c0_3 = arith.constant 0 : index
    %3 = vector.load %arg2[%c80, %c0_3] : memref<120x128xf32, #tpu.memory_space<vmem>>, vector<32x4xf32>
    %c112 = arith.constant 112 : index
    %c0_4 = arith.constant 0 : index
    %4 = vector.load %arg2[%c112, %c0_4] : memref<120x128xf32, #tpu.memory_space<vmem>>, vector<1x32xf32>
    %c113 = arith.constant 113 : index
    %c0_5 = arith.constant 0 : index
    %5 = vector.load %arg2[%c113, %c0_5] : memref<120x128xf32, #tpu.memory_space<vmem>>, vector<1x96xf32>
    %c114 = arith.constant 114 : index
    %c0_6 = arith.constant 0 : index
    %6 = vector.load %arg2[%c114, %c0_6] : memref<120x128xf32, #tpu.memory_space<vmem>>, vector<1x96xf32>
    %c115 = arith.constant 115 : index
    %c0_7 = arith.constant 0 : index
    %7 = vector.load %arg2[%c115, %c0_7] : memref<120x128xf32, #tpu.memory_space<vmem>>, vector<1x4xf32>
    %c0_8 = arith.constant 0 : index
    %c0_9 = arith.constant 0 : index
    %8 = vector.load %arg1[%c0_8, %c0_9] : memref<64x16xf32, #tpu.memory_space<vmem>>, vector<64x16xf32>
    %cst = arith.constant dense<0.000000e+00> : vector<64x32xf32>
    %9 = tpu.matmul %8, %0, %cst {dimension_numbers = #tpu.dot_dimension_numbers<[1], [0], [0], [1], [0, 0, 1, 1], [], []>} : vector<64x16xf32>, vector<16x32xf32>, vector<64x32xf32> -> vector<64x32xf32>
    %10 = vector.broadcast %4 : vector<1x32xf32> to vector<64x32xf32>
    %11 = arith.addf %9, %10 : vector<64x32xf32>
    %12 = math.tanh %11 : vector<64x32xf32>
    %cst_10 = arith.constant dense<0.000000e+00> : vector<64x96xf32>
    %13 = tpu.matmul %12, %1, %cst_10 {dimension_numbers = #tpu.dot_dimension_numbers<[1], [0], [0], [1], [0, 0, 1, 1], [], []>} : vector<64x32xf32>, vector<32x96xf32>, vector<64x96xf32> -> vector<64x96xf32>
    %14 = vector.broadcast %5 : vector<1x96xf32> to vector<64x96xf32>
    %15 = arith.addf %13, %14 : vector<64x96xf32>
    %16 = vector.shape_cast %6 : vector<1x96xf32> to vector<1x96xf32>
    %17 = vector.broadcast %16 : vector<1x96xf32> to vector<8x96xf32>
    %cst_11 = arith.constant 0.000000e+00 : f32
    %18 = vector.broadcast %cst_11 : f32 to vector<8x32xf32>
    %19 = vector.extract_strided_slice %15 {offsets = [0, 0], sizes = [8, 96], strides = [1, 1]} : vector<64x96xf32> to vector<8x96xf32>
    %cst_12 = arith.constant dense<0.000000e+00> : vector<8x96xf32>
    %20 = tpu.matmul %18, %2, %cst_12 {dimension_numbers = #tpu.dot_dimension_numbers<[1], [0], [0], [1], [0, 0, 1, 1], [], []>} : vector<8x32xf32>, vector<32x96xf32>, vector<8x96xf32> -> vector<8x96xf32>
    %21 = arith.addf %20, %17 : vector<8x96xf32>
    %22 = arith.addf %19, %21 : vector<8x96xf32>
    %23 = vector.extract_strided_slice %22 {offsets = [0, 0], sizes = [8, 32], strides = [1, 1]} : vector<8x96xf32> to vector<8x32xf32>
    %cst_13 = arith.constant 5.000000e-01 : f32
    %24 = vector.broadcast %cst_13 : f32 to vector<8x32xf32>
    %25 = arith.mulf %24, %23 : vector<8x32xf32>
    %26 = math.tanh %25 : vector<8x32xf32>
    %cst_14 = arith.constant 1.000000e+00 : f32
    %27 = vector.broadcast %cst_14 : f32 to vector<8x32xf32>
    %28 = arith.addf %26, %27 : vector<8x32xf32>
    %cst_15 = arith.constant 5.000000e-01 : f32
    %29 = vector.broadcast %cst_15 : f32 to vector<8x32xf32>
    %30 = arith.mulf %29, %28 : vector<8x32xf32>
    %31 = vector.extract_strided_slice %22 {offsets = [0, 32], sizes = [8, 32], strides = [1, 1]} : vector<8x96xf32> to vector<8x32xf32>
    %cst_16 = arith.constant 5.000000e-01 : f32
    %32 = vector.broadcast %cst_16 : f32 to vector<8x32xf32>
    %33 = arith.mulf %32, %31 : vector<8x32xf32>
    %34 = math.tanh %33 : vector<8x32xf32>
    %cst_17 = arith.constant 1.000000e+00 : f32
    %35 = vector.broadcast %cst_17 : f32 to vector<8x32xf32>
    %36 = arith.addf %34, %35 : vector<8x32xf32>
    %cst_18 = arith.constant 5.000000e-01 : f32
    %37 = vector.broadcast %cst_18 : f32 to vector<8x32xf32>
    %38 = arith.mulf %37, %36 : vector<8x32xf32>
    %39 = vector.extract_strided_slice %19 {offsets = [0, 64], sizes = [8, 32], strides = [1, 1]} : vector<8x96xf32> to vector<8x32xf32>
    %40 = vector.extract_strided_slice %21 {offsets = [0, 64], sizes = [8, 32], strides = [1, 1]} : vector<8x96xf32> to vector<8x32xf32>
    %41 = arith.mulf %30, %40 : vector<8x32xf32>
    %42 = arith.addf %39, %41 : vector<8x32xf32>
    %43 = math.tanh %42 : vector<8x32xf32>
    %cst_19 = arith.constant 1.000000e+00 : f32
    %44 = vector.broadcast %cst_19 : f32 to vector<8x32xf32>
    %45 = arith.subf %44, %38 : vector<8x32xf32>
    %46 = arith.mulf %45, %43 : vector<8x32xf32>
    %47 = arith.mulf %38, %18 : vector<8x32xf32>
    %48 = arith.addf %46, %47 : vector<8x32xf32>
    %49 = vector.extract_strided_slice %15 {offsets = [8, 0], sizes = [8, 96], strides = [1, 1]} : vector<64x96xf32> to vector<8x96xf32>
    %cst_20 = arith.constant dense<0.000000e+00> : vector<8x96xf32>
    %50 = tpu.matmul %48, %2, %cst_20 {dimension_numbers = #tpu.dot_dimension_numbers<[1], [0], [0], [1], [0, 0, 1, 1], [], []>} : vector<8x32xf32>, vector<32x96xf32>, vector<8x96xf32> -> vector<8x96xf32>
    %51 = arith.addf %50, %17 : vector<8x96xf32>
    %52 = arith.addf %49, %51 : vector<8x96xf32>
    %53 = vector.extract_strided_slice %52 {offsets = [0, 0], sizes = [8, 32], strides = [1, 1]} : vector<8x96xf32> to vector<8x32xf32>
    %cst_21 = arith.constant 5.000000e-01 : f32
    %54 = vector.broadcast %cst_21 : f32 to vector<8x32xf32>
    %55 = arith.mulf %54, %53 : vector<8x32xf32>
    %56 = math.tanh %55 : vector<8x32xf32>
    %cst_22 = arith.constant 1.000000e+00 : f32
    %57 = vector.broadcast %cst_22 : f32 to vector<8x32xf32>
    %58 = arith.addf %56, %57 : vector<8x32xf32>
    %cst_23 = arith.constant 5.000000e-01 : f32
    %59 = vector.broadcast %cst_23 : f32 to vector<8x32xf32>
    %60 = arith.mulf %59, %58 : vector<8x32xf32>
    %61 = vector.extract_strided_slice %52 {offsets = [0, 32], sizes = [8, 32], strides = [1, 1]} : vector<8x96xf32> to vector<8x32xf32>
    %cst_24 = arith.constant 5.000000e-01 : f32
    %62 = vector.broadcast %cst_24 : f32 to vector<8x32xf32>
    %63 = arith.mulf %62, %61 : vector<8x32xf32>
    %64 = math.tanh %63 : vector<8x32xf32>
    %cst_25 = arith.constant 1.000000e+00 : f32
    %65 = vector.broadcast %cst_25 : f32 to vector<8x32xf32>
    %66 = arith.addf %64, %65 : vector<8x32xf32>
    %cst_26 = arith.constant 5.000000e-01 : f32
    %67 = vector.broadcast %cst_26 : f32 to vector<8x32xf32>
    %68 = arith.mulf %67, %66 : vector<8x32xf32>
    %69 = vector.extract_strided_slice %49 {offsets = [0, 64], sizes = [8, 32], strides = [1, 1]} : vector<8x96xf32> to vector<8x32xf32>
    %70 = vector.extract_strided_slice %51 {offsets = [0, 64], sizes = [8, 32], strides = [1, 1]} : vector<8x96xf32> to vector<8x32xf32>
    %71 = arith.mulf %60, %70 : vector<8x32xf32>
    %72 = arith.addf %69, %71 : vector<8x32xf32>
    %73 = math.tanh %72 : vector<8x32xf32>
    %cst_27 = arith.constant 1.000000e+00 : f32
    %74 = vector.broadcast %cst_27 : f32 to vector<8x32xf32>
    %75 = arith.subf %74, %68 : vector<8x32xf32>
    %76 = arith.mulf %75, %73 : vector<8x32xf32>
    %77 = arith.mulf %68, %48 : vector<8x32xf32>
    %78 = arith.addf %76, %77 : vector<8x32xf32>
    %79 = vector.extract_strided_slice %15 {offsets = [16, 0], sizes = [8, 96], strides = [1, 1]} : vector<64x96xf32> to vector<8x96xf32>
    %cst_28 = arith.constant dense<0.000000e+00> : vector<8x96xf32>
    %80 = tpu.matmul %78, %2, %cst_28 {dimension_numbers = #tpu.dot_dimension_numbers<[1], [0], [0], [1], [0, 0, 1, 1], [], []>} : vector<8x32xf32>, vector<32x96xf32>, vector<8x96xf32> -> vector<8x96xf32>
    %81 = arith.addf %80, %17 : vector<8x96xf32>
    %82 = arith.addf %79, %81 : vector<8x96xf32>
    %83 = vector.extract_strided_slice %82 {offsets = [0, 0], sizes = [8, 32], strides = [1, 1]} : vector<8x96xf32> to vector<8x32xf32>
    %cst_29 = arith.constant 5.000000e-01 : f32
    %84 = vector.broadcast %cst_29 : f32 to vector<8x32xf32>
    %85 = arith.mulf %84, %83 : vector<8x32xf32>
    %86 = math.tanh %85 : vector<8x32xf32>
    %cst_30 = arith.constant 1.000000e+00 : f32
    %87 = vector.broadcast %cst_30 : f32 to vector<8x32xf32>
    %88 = arith.addf %86, %87 : vector<8x32xf32>
    %cst_31 = arith.constant 5.000000e-01 : f32
    %89 = vector.broadcast %cst_31 : f32 to vector<8x32xf32>
    %90 = arith.mulf %89, %88 : vector<8x32xf32>
    %91 = vector.extract_strided_slice %82 {offsets = [0, 32], sizes = [8, 32], strides = [1, 1]} : vector<8x96xf32> to vector<8x32xf32>
    %cst_32 = arith.constant 5.000000e-01 : f32
    %92 = vector.broadcast %cst_32 : f32 to vector<8x32xf32>
    %93 = arith.mulf %92, %91 : vector<8x32xf32>
    %94 = math.tanh %93 : vector<8x32xf32>
    %cst_33 = arith.constant 1.000000e+00 : f32
    %95 = vector.broadcast %cst_33 : f32 to vector<8x32xf32>
    %96 = arith.addf %94, %95 : vector<8x32xf32>
    %cst_34 = arith.constant 5.000000e-01 : f32
    %97 = vector.broadcast %cst_34 : f32 to vector<8x32xf32>
    %98 = arith.mulf %97, %96 : vector<8x32xf32>
    %99 = vector.extract_strided_slice %79 {offsets = [0, 64], sizes = [8, 32], strides = [1, 1]} : vector<8x96xf32> to vector<8x32xf32>
    %100 = vector.extract_strided_slice %81 {offsets = [0, 64], sizes = [8, 32], strides = [1, 1]} : vector<8x96xf32> to vector<8x32xf32>
    %101 = arith.mulf %90, %100 : vector<8x32xf32>
    %102 = arith.addf %99, %101 : vector<8x32xf32>
    %103 = math.tanh %102 : vector<8x32xf32>
    %cst_35 = arith.constant 1.000000e+00 : f32
    %104 = vector.broadcast %cst_35 : f32 to vector<8x32xf32>
    %105 = arith.subf %104, %98 : vector<8x32xf32>
    %106 = arith.mulf %105, %103 : vector<8x32xf32>
    %107 = arith.mulf %98, %78 : vector<8x32xf32>
    %108 = arith.addf %106, %107 : vector<8x32xf32>
    %109 = vector.extract_strided_slice %15 {offsets = [24, 0], sizes = [8, 96], strides = [1, 1]} : vector<64x96xf32> to vector<8x96xf32>
    %cst_36 = arith.constant dense<0.000000e+00> : vector<8x96xf32>
    %110 = tpu.matmul %108, %2, %cst_36 {dimension_numbers = #tpu.dot_dimension_numbers<[1], [0], [0], [1], [0, 0, 1, 1], [], []>} : vector<8x32xf32>, vector<32x96xf32>, vector<8x96xf32> -> vector<8x96xf32>
    %111 = arith.addf %110, %17 : vector<8x96xf32>
    %112 = arith.addf %109, %111 : vector<8x96xf32>
    %113 = vector.extract_strided_slice %112 {offsets = [0, 0], sizes = [8, 32], strides = [1, 1]} : vector<8x96xf32> to vector<8x32xf32>
    %cst_37 = arith.constant 5.000000e-01 : f32
    %114 = vector.broadcast %cst_37 : f32 to vector<8x32xf32>
    %115 = arith.mulf %114, %113 : vector<8x32xf32>
    %116 = math.tanh %115 : vector<8x32xf32>
    %cst_38 = arith.constant 1.000000e+00 : f32
    %117 = vector.broadcast %cst_38 : f32 to vector<8x32xf32>
    %118 = arith.addf %116, %117 : vector<8x32xf32>
    %cst_39 = arith.constant 5.000000e-01 : f32
    %119 = vector.broadcast %cst_39 : f32 to vector<8x32xf32>
    %120 = arith.mulf %119, %118 : vector<8x32xf32>
    %121 = vector.extract_strided_slice %112 {offsets = [0, 32], sizes = [8, 32], strides = [1, 1]} : vector<8x96xf32> to vector<8x32xf32>
    %cst_40 = arith.constant 5.000000e-01 : f32
    %122 = vector.broadcast %cst_40 : f32 to vector<8x32xf32>
    %123 = arith.mulf %122, %121 : vector<8x32xf32>
    %124 = math.tanh %123 : vector<8x32xf32>
    %cst_41 = arith.constant 1.000000e+00 : f32
    %125 = vector.broadcast %cst_41 : f32 to vector<8x32xf32>
    %126 = arith.addf %124, %125 : vector<8x32xf32>
    %cst_42 = arith.constant 5.000000e-01 : f32
    %127 = vector.broadcast %cst_42 : f32 to vector<8x32xf32>
    %128 = arith.mulf %127, %126 : vector<8x32xf32>
    %129 = vector.extract_strided_slice %109 {offsets = [0, 64], sizes = [8, 32], strides = [1, 1]} : vector<8x96xf32> to vector<8x32xf32>
    %130 = vector.extract_strided_slice %111 {offsets = [0, 64], sizes = [8, 32], strides = [1, 1]} : vector<8x96xf32> to vector<8x32xf32>
    %131 = arith.mulf %120, %130 : vector<8x32xf32>
    %132 = arith.addf %129, %131 : vector<8x32xf32>
    %133 = math.tanh %132 : vector<8x32xf32>
    %cst_43 = arith.constant 1.000000e+00 : f32
    %134 = vector.broadcast %cst_43 : f32 to vector<8x32xf32>
    %135 = arith.subf %134, %128 : vector<8x32xf32>
    %136 = arith.mulf %135, %133 : vector<8x32xf32>
    %137 = arith.mulf %128, %108 : vector<8x32xf32>
    %138 = arith.addf %136, %137 : vector<8x32xf32>
    %139 = vector.extract_strided_slice %15 {offsets = [32, 0], sizes = [8, 96], strides = [1, 1]} : vector<64x96xf32> to vector<8x96xf32>
    %cst_44 = arith.constant dense<0.000000e+00> : vector<8x96xf32>
    %140 = tpu.matmul %138, %2, %cst_44 {dimension_numbers = #tpu.dot_dimension_numbers<[1], [0], [0], [1], [0, 0, 1, 1], [], []>} : vector<8x32xf32>, vector<32x96xf32>, vector<8x96xf32> -> vector<8x96xf32>
    %141 = arith.addf %140, %17 : vector<8x96xf32>
    %142 = arith.addf %139, %141 : vector<8x96xf32>
    %143 = vector.extract_strided_slice %142 {offsets = [0, 0], sizes = [8, 32], strides = [1, 1]} : vector<8x96xf32> to vector<8x32xf32>
    %cst_45 = arith.constant 5.000000e-01 : f32
    %144 = vector.broadcast %cst_45 : f32 to vector<8x32xf32>
    %145 = arith.mulf %144, %143 : vector<8x32xf32>
    %146 = math.tanh %145 : vector<8x32xf32>
    %cst_46 = arith.constant 1.000000e+00 : f32
    %147 = vector.broadcast %cst_46 : f32 to vector<8x32xf32>
    %148 = arith.addf %146, %147 : vector<8x32xf32>
    %cst_47 = arith.constant 5.000000e-01 : f32
    %149 = vector.broadcast %cst_47 : f32 to vector<8x32xf32>
    %150 = arith.mulf %149, %148 : vector<8x32xf32>
    %151 = vector.extract_strided_slice %142 {offsets = [0, 32], sizes = [8, 32], strides = [1, 1]} : vector<8x96xf32> to vector<8x32xf32>
    %cst_48 = arith.constant 5.000000e-01 : f32
    %152 = vector.broadcast %cst_48 : f32 to vector<8x32xf32>
    %153 = arith.mulf %152, %151 : vector<8x32xf32>
    %154 = math.tanh %153 : vector<8x32xf32>
    %cst_49 = arith.constant 1.000000e+00 : f32
    %155 = vector.broadcast %cst_49 : f32 to vector<8x32xf32>
    %156 = arith.addf %154, %155 : vector<8x32xf32>
    %cst_50 = arith.constant 5.000000e-01 : f32
    %157 = vector.broadcast %cst_50 : f32 to vector<8x32xf32>
    %158 = arith.mulf %157, %156 : vector<8x32xf32>
    %159 = vector.extract_strided_slice %139 {offsets = [0, 64], sizes = [8, 32], strides = [1, 1]} : vector<8x96xf32> to vector<8x32xf32>
    %160 = vector.extract_strided_slice %141 {offsets = [0, 64], sizes = [8, 32], strides = [1, 1]} : vector<8x96xf32> to vector<8x32xf32>
    %161 = arith.mulf %150, %160 : vector<8x32xf32>
    %162 = arith.addf %159, %161 : vector<8x32xf32>
    %163 = math.tanh %162 : vector<8x32xf32>
    %cst_51 = arith.constant 1.000000e+00 : f32
    %164 = vector.broadcast %cst_51 : f32 to vector<8x32xf32>
    %165 = arith.subf %164, %158 : vector<8x32xf32>
    %166 = arith.mulf %165, %163 : vector<8x32xf32>
    %167 = arith.mulf %158, %138 : vector<8x32xf32>
    %168 = arith.addf %166, %167 : vector<8x32xf32>
    %169 = vector.extract_strided_slice %15 {offsets = [40, 0], sizes = [8, 96], strides = [1, 1]} : vector<64x96xf32> to vector<8x96xf32>
    %cst_52 = arith.constant dense<0.000000e+00> : vector<8x96xf32>
    %170 = tpu.matmul %168, %2, %cst_52 {dimension_numbers = #tpu.dot_dimension_numbers<[1], [0], [0], [1], [0, 0, 1, 1], [], []>} : vector<8x32xf32>, vector<32x96xf32>, vector<8x96xf32> -> vector<8x96xf32>
    %171 = arith.addf %170, %17 : vector<8x96xf32>
    %172 = arith.addf %169, %171 : vector<8x96xf32>
    %173 = vector.extract_strided_slice %172 {offsets = [0, 0], sizes = [8, 32], strides = [1, 1]} : vector<8x96xf32> to vector<8x32xf32>
    %cst_53 = arith.constant 5.000000e-01 : f32
    %174 = vector.broadcast %cst_53 : f32 to vector<8x32xf32>
    %175 = arith.mulf %174, %173 : vector<8x32xf32>
    %176 = math.tanh %175 : vector<8x32xf32>
    %cst_54 = arith.constant 1.000000e+00 : f32
    %177 = vector.broadcast %cst_54 : f32 to vector<8x32xf32>
    %178 = arith.addf %176, %177 : vector<8x32xf32>
    %cst_55 = arith.constant 5.000000e-01 : f32
    %179 = vector.broadcast %cst_55 : f32 to vector<8x32xf32>
    %180 = arith.mulf %179, %178 : vector<8x32xf32>
    %181 = vector.extract_strided_slice %172 {offsets = [0, 32], sizes = [8, 32], strides = [1, 1]} : vector<8x96xf32> to vector<8x32xf32>
    %cst_56 = arith.constant 5.000000e-01 : f32
    %182 = vector.broadcast %cst_56 : f32 to vector<8x32xf32>
    %183 = arith.mulf %182, %181 : vector<8x32xf32>
    %184 = math.tanh %183 : vector<8x32xf32>
    %cst_57 = arith.constant 1.000000e+00 : f32
    %185 = vector.broadcast %cst_57 : f32 to vector<8x32xf32>
    %186 = arith.addf %184, %185 : vector<8x32xf32>
    %cst_58 = arith.constant 5.000000e-01 : f32
    %187 = vector.broadcast %cst_58 : f32 to vector<8x32xf32>
    %188 = arith.mulf %187, %186 : vector<8x32xf32>
    %189 = vector.extract_strided_slice %169 {offsets = [0, 64], sizes = [8, 32], strides = [1, 1]} : vector<8x96xf32> to vector<8x32xf32>
    %190 = vector.extract_strided_slice %171 {offsets = [0, 64], sizes = [8, 32], strides = [1, 1]} : vector<8x96xf32> to vector<8x32xf32>
    %191 = arith.mulf %180, %190 : vector<8x32xf32>
    %192 = arith.addf %189, %191 : vector<8x32xf32>
    %193 = math.tanh %192 : vector<8x32xf32>
    %cst_59 = arith.constant 1.000000e+00 : f32
    %194 = vector.broadcast %cst_59 : f32 to vector<8x32xf32>
    %195 = arith.subf %194, %188 : vector<8x32xf32>
    %196 = arith.mulf %195, %193 : vector<8x32xf32>
    %197 = arith.mulf %188, %168 : vector<8x32xf32>
    %198 = arith.addf %196, %197 : vector<8x32xf32>
    %199 = vector.extract_strided_slice %15 {offsets = [48, 0], sizes = [8, 96], strides = [1, 1]} : vector<64x96xf32> to vector<8x96xf32>
    %cst_60 = arith.constant dense<0.000000e+00> : vector<8x96xf32>
    %200 = tpu.matmul %198, %2, %cst_60 {dimension_numbers = #tpu.dot_dimension_numbers<[1], [0], [0], [1], [0, 0, 1, 1], [], []>} : vector<8x32xf32>, vector<32x96xf32>, vector<8x96xf32> -> vector<8x96xf32>
    %201 = arith.addf %200, %17 : vector<8x96xf32>
    %202 = arith.addf %199, %201 : vector<8x96xf32>
    %203 = vector.extract_strided_slice %202 {offsets = [0, 0], sizes = [8, 32], strides = [1, 1]} : vector<8x96xf32> to vector<8x32xf32>
    %cst_61 = arith.constant 5.000000e-01 : f32
    %204 = vector.broadcast %cst_61 : f32 to vector<8x32xf32>
    %205 = arith.mulf %204, %203 : vector<8x32xf32>
    %206 = math.tanh %205 : vector<8x32xf32>
    %cst_62 = arith.constant 1.000000e+00 : f32
    %207 = vector.broadcast %cst_62 : f32 to vector<8x32xf32>
    %208 = arith.addf %206, %207 : vector<8x32xf32>
    %cst_63 = arith.constant 5.000000e-01 : f32
    %209 = vector.broadcast %cst_63 : f32 to vector<8x32xf32>
    %210 = arith.mulf %209, %208 : vector<8x32xf32>
    %211 = vector.extract_strided_slice %202 {offsets = [0, 32], sizes = [8, 32], strides = [1, 1]} : vector<8x96xf32> to vector<8x32xf32>
    %cst_64 = arith.constant 5.000000e-01 : f32
    %212 = vector.broadcast %cst_64 : f32 to vector<8x32xf32>
    %213 = arith.mulf %212, %211 : vector<8x32xf32>
    %214 = math.tanh %213 : vector<8x32xf32>
    %cst_65 = arith.constant 1.000000e+00 : f32
    %215 = vector.broadcast %cst_65 : f32 to vector<8x32xf32>
    %216 = arith.addf %214, %215 : vector<8x32xf32>
    %cst_66 = arith.constant 5.000000e-01 : f32
    %217 = vector.broadcast %cst_66 : f32 to vector<8x32xf32>
    %218 = arith.mulf %217, %216 : vector<8x32xf32>
    %219 = vector.extract_strided_slice %199 {offsets = [0, 64], sizes = [8, 32], strides = [1, 1]} : vector<8x96xf32> to vector<8x32xf32>
    %220 = vector.extract_strided_slice %201 {offsets = [0, 64], sizes = [8, 32], strides = [1, 1]} : vector<8x96xf32> to vector<8x32xf32>
    %221 = arith.mulf %210, %220 : vector<8x32xf32>
    %222 = arith.addf %219, %221 : vector<8x32xf32>
    %223 = math.tanh %222 : vector<8x32xf32>
    %cst_67 = arith.constant 1.000000e+00 : f32
    %224 = vector.broadcast %cst_67 : f32 to vector<8x32xf32>
    %225 = arith.subf %224, %218 : vector<8x32xf32>
    %226 = arith.mulf %225, %223 : vector<8x32xf32>
    %227 = arith.mulf %218, %198 : vector<8x32xf32>
    %228 = arith.addf %226, %227 : vector<8x32xf32>
    %229 = vector.extract_strided_slice %15 {offsets = [56, 0], sizes = [8, 96], strides = [1, 1]} : vector<64x96xf32> to vector<8x96xf32>
    %cst_68 = arith.constant dense<0.000000e+00> : vector<8x96xf32>
    %230 = tpu.matmul %228, %2, %cst_68 {dimension_numbers = #tpu.dot_dimension_numbers<[1], [0], [0], [1], [0, 0, 1, 1], [], []>} : vector<8x32xf32>, vector<32x96xf32>, vector<8x96xf32> -> vector<8x96xf32>
    %231 = arith.addf %230, %17 : vector<8x96xf32>
    %232 = arith.addf %229, %231 : vector<8x96xf32>
    %233 = vector.extract_strided_slice %232 {offsets = [0, 0], sizes = [8, 32], strides = [1, 1]} : vector<8x96xf32> to vector<8x32xf32>
    %cst_69 = arith.constant 5.000000e-01 : f32
    %234 = vector.broadcast %cst_69 : f32 to vector<8x32xf32>
    %235 = arith.mulf %234, %233 : vector<8x32xf32>
    %236 = math.tanh %235 : vector<8x32xf32>
    %cst_70 = arith.constant 1.000000e+00 : f32
    %237 = vector.broadcast %cst_70 : f32 to vector<8x32xf32>
    %238 = arith.addf %236, %237 : vector<8x32xf32>
    %cst_71 = arith.constant 5.000000e-01 : f32
    %239 = vector.broadcast %cst_71 : f32 to vector<8x32xf32>
    %240 = arith.mulf %239, %238 : vector<8x32xf32>
    %241 = vector.extract_strided_slice %232 {offsets = [0, 32], sizes = [8, 32], strides = [1, 1]} : vector<8x96xf32> to vector<8x32xf32>
    %cst_72 = arith.constant 5.000000e-01 : f32
    %242 = vector.broadcast %cst_72 : f32 to vector<8x32xf32>
    %243 = arith.mulf %242, %241 : vector<8x32xf32>
    %244 = math.tanh %243 : vector<8x32xf32>
    %cst_73 = arith.constant 1.000000e+00 : f32
    %245 = vector.broadcast %cst_73 : f32 to vector<8x32xf32>
    %246 = arith.addf %244, %245 : vector<8x32xf32>
    %cst_74 = arith.constant 5.000000e-01 : f32
    %247 = vector.broadcast %cst_74 : f32 to vector<8x32xf32>
    %248 = arith.mulf %247, %246 : vector<8x32xf32>
    %249 = vector.extract_strided_slice %229 {offsets = [0, 64], sizes = [8, 32], strides = [1, 1]} : vector<8x96xf32> to vector<8x32xf32>
    %250 = vector.extract_strided_slice %231 {offsets = [0, 64], sizes = [8, 32], strides = [1, 1]} : vector<8x96xf32> to vector<8x32xf32>
    %251 = arith.mulf %240, %250 : vector<8x32xf32>
    %252 = arith.addf %249, %251 : vector<8x32xf32>
    %253 = math.tanh %252 : vector<8x32xf32>
    %cst_75 = arith.constant 1.000000e+00 : f32
    %254 = vector.broadcast %cst_75 : f32 to vector<8x32xf32>
    %255 = arith.subf %254, %248 : vector<8x32xf32>
    %256 = arith.mulf %255, %253 : vector<8x32xf32>
    %257 = arith.mulf %248, %228 : vector<8x32xf32>
    %258 = arith.addf %256, %257 : vector<8x32xf32>
    %259 = tpu.concatenate %48, %78, %108, %138, %168, %198, %228, %258 in 0 : vector<8x32xf32>, vector<8x32xf32>, vector<8x32xf32>, vector<8x32xf32>, vector<8x32xf32>, vector<8x32xf32>, vector<8x32xf32>, vector<8x32xf32> -> vector<64x32xf32>
    %cst_76 = arith.constant dense<0.000000e+00> : vector<64x4xf32>
    %260 = tpu.matmul %259, %3, %cst_76 {dimension_numbers = #tpu.dot_dimension_numbers<[1], [0], [0], [1], [0, 0, 1, 1], [], []>} : vector<64x32xf32>, vector<32x4xf32>, vector<64x4xf32> -> vector<64x4xf32>
    %261 = vector.broadcast %7 : vector<1x4xf32> to vector<64x4xf32>
    %262 = arith.addf %260, %261 : vector<64x4xf32>
    %c0_77 = arith.constant 0 : index
    %c0_78 = arith.constant 0 : index
    %263 = vector.load %arg3[%c0_77, %c0_78] : memref<64x4xf32, #tpu.memory_space<vmem>>, vector<64x4xf32>
    tpu.vector_store %arg3[%c0_77, %c0_78], %262 {strides = array<i32>} : memref<64x4xf32, #tpu.memory_space<vmem>>, vector<64x4xf32>,
    return
  }
  func.func @transform_0(%arg0: i32) -> (i32, i32) {
    %c0_i32 = arith.constant 0 : i32
    %c0_i32_0 = arith.constant 0 : i32
    %c0_i32_1 = arith.constant 0 : i32
    return %c0_i32, %c0_i32_0 : i32, i32
  }
  func.func @transform_1(%arg0: i32) -> (i32, i32) {
    %c0_i32 = arith.constant 0 : i32
    %c0_i32_0 = arith.constant 0 : i32
    %c0_i32_1 = arith.constant 0 : i32
    return %c0_i32, %c0_i32_0 : i32, i32
  }
  func.func @transform_2(%arg0: i32) -> (i32, i32) {
    %c0_i32 = arith.constant 0 : i32
    %c0_i32_0 = arith.constant 0 : i32
    %c0_i32_1 = arith.constant 0 : i32
    return %c0_i32, %c0_i32_0 : i32, i32
  }
}

</mosaic_0001>

<bundles_post_ra>
// kernel: tpu_custom_call.1
= control target key start
LH: loop header
LB: loop body
LE: loop exit
PB: predicated region body
PF: predicated region fallthrough
CT: control target
= control target key end

     0   :  { %7 = vsyncpa [#allocation3], 0  ;;  %s1583_s9 = smov [#allocation2]   ;;  %s1877_s0 = inlined_call_operand.vmem [shape: f32[64,16], index: 0, kind: input, shape index: {}]   ;;  %s1878_s1 = inlined_call_operand.hbm [shape: f32[120,128], index: 1, kind: input, shape index: {}]   ;;  %s1879_s2 = inlined_call_operand.vmem [shape: f32[64,4], index: 2, kind: output, shape index: {}]  }
   0x1   :  { %s15_s10 = sshll.u32 %s1583_s9, 4  ;;  %s16_s10 = int_to_ptr.vmem [resolvable:$true] %s15_s10 }
   0x2   :  { %s1569_s11 = scalar_lea.vmem %s16_s10, 1920  ;;  %p1574_p1 = scmp.lt.s32.totalorder %s16_s10, %s16_s10 }
   0x3   :  { %p1570_p0 = scmp.ne.s32.totalorder %s16_s10, %s1569_s11  ;;  %p1575_p2 = scmp.lt.s32.totalorder %s1569_s11, %s1569_s11 }
   0x5   :  { %p1576_p3 = por %p1575_p2, %p1574_p1 }
   0x7   :  { %p1577_p4 = pnand %p1576_p3, %p1570_p0 }
   0x9   :  { %1580 = shalt.err (!%p1577_p4)
}
   0xa   :  { %s1584_s12 = smov 128   ;;  %s1585_s13 = smov 8  }
   0xb   :  { %21 = dma.hbm_to_vmem [thread:$0]  %s1878_s1, 1920, %s16_s10, [#allocation3], %s1584_s12, %s1584_s12, %s1585_s13  }
   0xc   :  { %1581 = dma.done.wait [#allocation3], 1920  }
   0xd   :  { %1582 = vsyncadd [#allocation3], 4294965376  ;;  %vm55_vm0 = vcmask 130048   ;;  %v26_v0 = vld [vmem:[#allocation2 + $0x8] sm:$0xff]  ;;  %v25_v1 = vld [vmem:[#allocation2] sm:$0xff]  ;;  %v1586_v6 = vmov 0.0  }
   0xe   :  { %v43_v2 = vld [vmem:[%s1877_s0] sm:$0xff]  ;;  %1358 = vmatprep.subr.mxu0 %v26_v0  ;;  %v44_v3 = vld [vmem:[%s1877_s0 + $0x8] sm:$0xff]  ;;  %1502 = vmatprep.subr.mxu1 %v26_v0  ;;  %v45_v4 = vld [vmem:[%s1877_s0 + $0x10] sm:$0xff]  ;;  %vm1587_vm1 = vmmov 0   ;;  %vm197_vm2 = vcmask 261120   ;;  %s1589_s3 = smov 96  }
   0xf   :  { %1362 = vmatprep.mubr.msk.f32.mxu0 %vm55_vm0, %v43_v2  ;;  %1359 = vmatpush3.msra.mxu0 %v26_v0  ;;  %v1618_v5 = vld [vmem:[#allocation2 + $0x48] sm:$0xff]  ;;  %v1622_v7 = vld [vmem:[#allocation2 + $0x40] sm:$0xff]  ;;  %v46_v8 = vld [vmem:[%s1877_s0 + $0x18] sm:$0xff]  ;;  %vm1235_vm3 = vcmask 31744  }
  0x10   :  { %1360 = vmatprep.subr.mxu0 %v25_v1  ;;  %1504 = vmatpush3.msra.mxu1 %v26_v0  ;;  %v1630_v9 = vld [vmem:[#allocation2 + $0x38] sm:$0xff]  ;;  %v1635_v10 = vld [vmem:[#allocation2 + $0x30] sm:$0xff]  ;;  %v47_v11 = vld [vmem:[%s1877_s0 + $0x20] sm:$0xff] }
  0x11   :  { %1361 = vmatpush3.msra.mxu0 %v25_v1  ;;  %1503 = vmatprep.subr.mxu1 %v25_v1  ;;  %v48_v12 = vld [vmem:[%s1877_s0 + $0x28] sm:$0xff]  ;;  %v49_v13 = vld [vmem:[%s1877_s0 + $0x30] sm:$0xff]  ;;  %v29_v15 = vld [vmem:[#allocation2 + $0x20] sm:$0xff] }
  0x12   :  { %1363 = vmatmul.mubr.msk.f32.vlgmr.msra.gmra.mxu0 %vm55_vm0, %v44_v3  ;;  %1394 = vmatprep.subr.mxu0 %v1586_v6  ;;  %v30_v14 = vld [vmem:[#allocation2 + $0x28] sm:$0xff]  ;;  %v50_v16 = vld [vmem:[%s1877_s0 + $0x38] sm:$0xff]  ;;  %v27_v18 = vld [vmem:[#allocation2 + $0x10] sm:$0xff]  ;;  %s1588_s0 = smov 64  }
  0x13   :  { %1365 = vmatprep.mubr.msk.f32.mxu0 %vm55_vm0, %v45_v4  ;;  %1395 = vmatpush3.msra.mxu0 %v1618_v5  ;;  %v28_v17 = vld [vmem:[#allocation2 + $0x18] sm:$0xff]  ;;  %v1249_v19 = vld [vmem:[#allocation2 + $0x70] ss:$0 sm:$0xff]  ;;  %v1671_v27 = vld [vmem:[#allocation2 + $0x72] ss:$0 sm:$0xff] }
  0x14   :  { %1396 = vmatprep.subr.mxu0 %v1586_v6  ;;  %1505 = vmatpush3.msra.mxu1 %v25_v1  ;;  %v1693_v49 = vld [vmem:[#allocation2 + $0x71] ss:$0 sm:$0xff] }
  0x15   :  { %1397 = vmatpush3.msra.mxu0 %v1622_v7  ;;  %1368 = vmatprep.mubr.msk.f32.mxu1 %vm55_vm0, %v47_v11 }
  0x16   :  { %1366 = vmatmul.mubr.msk.f32.gmra.mxu0 %vm55_vm0, %v46_v8  ;;  %1398 = vmatprep.subr.mxu0 %v1586_v6 }
  0x17   :  { %1399 = vmatpush3.msra.mxu0 %v1630_v9  ;;  %1402 = vmatprep.mubr.msk.f32.mxu0 %vm1587_vm1, %v1586_v6 }
  0x18   :  { %1400 = vmatprep.subr.mxu0 %v1586_v6  ;;  %1369 = vmatmul.mubr.msk.f32.vlgmr.msra.gmra.mxu1 %vm55_vm0, %v48_v12 }
  0x19   :  { %1401 = vmatpush3.msra.mxu0 %v1635_v10  ;;  %1374 = vmatprep.subr.mxu1 %v30_v14 }
  0x1a   :  { %1403 = vmatmul.mubr.f32.vlgmr.msra.gmra.mxu0 %v1586_v6  ;;  %1416 = vmatprep.subr.mxu0 %v1586_v6 }
  0x1b   :  { %1417 = vmatpush3.msra.mxu0 %v1618_v5  ;;  %1424 = vmatprep.mubr.msk.f32.mxu0 %vm1587_vm1, %v1586_v6 }
  0x1c   :  { %1418 = vmatprep.subr.mxu0 %v1586_v6  ;;  %1371 = vmatprep.mubr.msk.f32.mxu1 %vm55_vm0, %v49_v13 }
  0x1d   :  { %1419 = vmatpush3.msra.mxu0 %v1622_v7  ;;  %1375 = vmatpush3.msra.mxu1 %v30_v14 }
  0x1e   :  { %1420 = vmatprep.subr.mxu0 %v1586_v6  ;;  %1376 = vmatprep.subr.mxu1 %v29_v15 }
  0x1f   :  { %1421 = vmatpush3.msra.mxu0 %v1630_v9  ;;  %1377 = vmatpush3.msra.mxu1 %v29_v15 }
  0x20   :  { %1422 = vmatprep.subr.mxu0 %v1586_v6  ;;  %1372 = vmatmul.mubr.msk.f32.gmra.mxu1 %vm55_vm0, %v50_v16 }
  0x21   :  { %1423 = vmatpush3.msra.mxu0 %v1635_v10  ;;  %1378 = vmatprep.subr.mxu1 %v28_v17 }
  0x22   :  { %1438 = vmatprep.subr.mxu0 %v1586_v6  ;;  %1379 = vmatpush3.msra.mxu1 %v28_v17 }
  0x23   :  { %1380 = vmatprep.subr.mxu1 %v27_v18 }
  0x24   :  { %1381 = vmatpush3.msra.mxu1 %v27_v18 }
  0x25   :  { %1405 = vmatprep.subr.mxu1 %v1586_v6 }
  0xd2   :  { %v1364_v20 = vpop.f32.mrf.mxu0 }
  0xd3   :  { %v152_v21 = vadd.f32 %v1364_v20, %v1249_v19 }
  0xd4   :  { %v146_v22 = vpop.f32.mrf.mxu0 }
  0xd5   :  { %v147_v23 = vadd.f32 %v1249_v19, %v146_v22 }
  0xd6   :  { %v1367_v24 = vpop.f32.mrf.mxu0 }
  0xd7   :  { %1513 = vtanh.f32 %v147_v23  ;;  %v162_v25 = vadd.f32 %v1367_v24, %v1249_v19 }
  0xd8   :  { %1515 = vtanh.f32 %v152_v21  ;;  %v156_v26 = vpop.f32.mrf.mxu0  ;;  %v1370_v36 = vpop.f32.mrf.mxu1 }
  0xd9   :  { %v157_v28 = vadd.f32 %v1249_v19, %v156_v26  ;;  %1517 = vtanh.f32 %v162_v25  ;;  %v172_v37 = vadd.f32 %v1370_v36, %v1249_v19 }
  0xda   :  { %v400_v29 = vpop.f32.mrf.mxu0  ;;  %v166_v38 = vpop.f32.mrf.mxu1 }
  0xdb   :  { %1519 = vtanh.f32 %v157_v28  ;;  %v401_v30 = vadd.f32 %v1671_v27, %v400_v29  ;;  %v167_v39 = vadd.f32 %v1249_v19, %v166_v38 }
  0xdc   :  { %v1404_v31 = vpop.f32.mrf.mxu0  ;;  %1521 = vtanh.f32 %v172_v37 }
  0xdd   :  { %410 = vrot.lane.b32.xlu0 %v401_v30, %s1588_s0  ;;  %1523 = vtanh.f32 %v167_v39 }
  0xe0   :  { %v1373_v40 = vpop.f32.mrf.mxu1 }
  0xe1   :  { %v182_v41 = vadd.f32 %v1373_v40, %v1249_v19 }
  0xe2   :  { %v176_v42 = vpop.f32.mrf.mxu1 }
  0xe3   :  { %v177_v43 = vadd.f32 %v1249_v19, %v176_v42  ;;  %1525 = vtanh.f32 %v182_v41 }
  0xe4   :  { %v1514_v32 = vpop.eup %1513 }
  0xe5   :  { %v1516_v33 = vpop.eup %1515  ;;  %1382 = vmatprep.mubr.msk.f32.mxu1 %vm197_vm2, %v1514_v32  ;;  %1527 = vtanh.f32 %v177_v43 }
  0xe6   :  { %1383 = vmatmul.mubr.msk.f32.vlgmr.msra.gmra.mxu1 %vm197_vm2, %v1516_v33  ;;  %v1518_v34 = vpop.eup %1517 }
  0xe7   :  { %1406 = vmatpush3.msra.mxu1 %v1618_v5 }
  0xe8   :  { %v1520_v35 = vpop.eup %1519  ;;  %1407 = vmatprep.subr.mxu1 %v1586_v6 }
  0xe9   :  { %1385 = vmatprep.mubr.msk.f32.mxu1 %vm197_vm2, %v1520_v35  ;;  %1408 = vmatpush3.msra.mxu1 %v1622_v7  ;;  %v1522_v44 = vpop.eup %1521 }
  0xea   :  { %1386 = vmatmul.mubr.msk.f32.gmra.mxu1 %vm197_vm2, %v1518_v34  ;;  %1409 = vmatprep.subr.mxu1 %v1586_v6  ;;  %v1524_v45 = vpop.eup %1523 }
  0xeb   :  { %1410 = vmatpush3.msra.mxu1 %v1630_v9  ;;  %1388 = vmatprep.mubr.msk.f32.mxu1 %vm197_vm2, %v1524_v45 }
  0xec   :  { %1411 = vmatprep.subr.mxu1 %v1586_v6 }
  0xed   :  { %1412 = vmatpush3.msra.mxu1 %v1635_v10 }
  0xee   :  { %1427 = vmatprep.subr.mxu1 %v1586_v6  ;;  %1389 = vmatmul.mubr.msk.f32.gmra.mxu1 %vm197_vm2, %v1522_v44 }
  0xf0   :  { %v1526_v46 = vpop.eup %1525 }
  0xf2   :  { %v1528_v47 = vpop.eup %1527 }
  0xf3   :  { %1391 = vmatprep.mubr.msk.f32.mxu1 %vm197_vm2, %v1528_v47 }
  0xf4   :  { %1392 = vmatmul.mubr.msk.f32.gmra.mxu1 %vm197_vm2, %v1526_v46 }
  0xf5   :  { %1413 = vmatprep.mubr.msk.f32.mxu1 %vm1587_vm1, %v1586_v6 }
 0x14f   :  { %v411_v56 = vpop.permute.xlu0 %410 }
 0x1a6   :  { %v1384_v48 = vpop.f32.mrf.mxu1 }
 0x1a7   :  { %v294_v18 = vadd.f32 %v1384_v48, %v1693_v49 }
 0x1a8   :  { %v288_v50 = vpop.f32.mrf.mxu1 }
 0x1a9   :  { %v289_v51 = vadd.f32 %v1693_v49, %v288_v50 }
 0x1aa   :  { %v1713_v4 = vpop.f32.mrf.mxu1 }
 0x1ab   :  { %v404_v52 = vadd.f32 %v401_v30, %v289_v51 }
 0x1ac   :  { %v298_v8 = vpop.f32.mrf.mxu1 }
 0x1ad   :  { %v405_v53 = vmul.f32 0.5, %v404_v52  ;;  %v299_v39 = vadd.f32 %v1693_v49, %v298_v8 }
 0x1ae   :  { %v1715_v11 = vpop.f32.mrf.mxu1 }
 0x1af   :  { %1529 = vtanh.f32 %v405_v53 }
 0x1b0   :  { %v1717_v12 = vpop.f32.mrf.mxu1 }
 0x1b4   :  { %v1719_v13 = vpop.f32.mrf.mxu1 }
 0x1b6   :  { %v1721_v14 = vpop.f32.mrf.mxu1 }
 0x1bc   :  { %v1530_v54 = vpop.eup %1529 }
 0x1bd   :  { %v407_v55 = vadd.f32 1.0, %v1530_v54 }
 0x1bf   :  { %v408_v57 = vmul.f32 0.5, %v407_v55 }
 0x1c1   :  { %v413_v58 = vmul.f32 %v411_v56, %v408_v57  ;;  %v420_v62 = vsub.f32 1.0, %v408_v57  ;;  %v426_v0 = vmul.f32 0.0, %v408_v57 }
 0x1c3   :  { %415 = vrot.lane.b32.xlu0 %v413_v58, %s1588_s0 }
 0x235   :  { %v416_v59 = vpop.permute.xlu0 %415 }
 0x236   :  { %v418_v60 = vadd.f32 %v416_v59, %v289_v51 }
 0x238   :  { %1531 = vtanh.f32 %v418_v60  ;;  %v304_v60 = vadd.f32 %v1713_v4, %v1693_v49 }
 0x245   :  { %v1532_v61 = vpop.eup %1531 }
 0x246   :  { %422 = vrot.lane.b32.xlu1 %v1532_v61, %s1589_s3 }
 0x2b8   :  { %v423_v63 = vpop.permute.xlu1 %422 }
 0x2b9   :  { %v425_v1 = vmul.f32 %v423_v63, %v420_v62 }
 0x2bb   :  { %v427_v2 = vadd.f32 %v426_v0, %v425_v1 }
 0x2bd   :  { %429 = vrot.lane.b32.xlu1 %v427_v2, %s1589_s3 }
 0x32f   :  { %v1699_v3 = vpop.permute.xlu1 %429 }
 0x330   :  { %1414 = vmatmul.mubr.msk.f32.vlgmr.msra.gmra.mxu1 %vm197_vm2, %v1699_v3 }
 0x331   :  { %1428 = vmatpush3.msra.mxu1 %v1618_v5  ;;  %1435 = vmatprep.mubr.msk.f32.mxu1 %vm1587_vm1, %v1586_v6 }
 0x332   :  { %1429 = vmatprep.subr.mxu1 %v1586_v6 }
 0x333   :  { %1430 = vmatpush3.msra.mxu1 %v1622_v7 }
 0x334   :  { %1431 = vmatprep.subr.mxu1 %v1586_v6 }
 0x335   :  { %1432 = vmatpush3.msra.mxu1 %v1630_v9 }
 0x336   :  { %1433 = vmatprep.subr.mxu1 %v1586_v6 }
 0x337   :  { %1434 = vmatpush3.msra.mxu1 %v1635_v10 }
 0x338   :  { %1449 = vmatprep.subr.mxu1 %v1586_v6 }
 0x3f0   :  { %v499_v15 = vpop.f32.mrf.mxu1 }
 0x3f1   :  { %v500_v16 = vadd.f32 %v1671_v27, %v499_v15 }
 0x3f2   :  { %v1415_v17 = vpop.f32.mrf.mxu1 }
 0x3f3   :  { %509 = vrot.lane.b32.xlu0 %v500_v16, %s1588_s0  ;;  %v503_v19 = vadd.f32 %v500_v16, %v294_v18 }
 0x3f5   :  { %v504_v20 = vmul.f32 0.5, %v503_v19 }
 0x3f7   :  { %1533 = vtanh.f32 %v504_v20 }
 0x404   :  { %v1534_v21 = vpop.eup %1533 }
 0x405   :  { %v506_v22 = vadd.f32 1.0, %v1534_v21 }
 0x407   :  { %v507_v23 = vmul.f32 0.5, %v506_v22 }
 0x409   :  { %v519_v30 = vsub.f32 1.0, %v507_v23  ;;  %v525_v32 = vmul.f32 %v507_v23, %v427_v2 }
 0x465   :  { %v510_v24 = vpop.permute.xlu0 %509 }
 0x466   :  { %v512_v25 = vmul.f32 %v510_v24, %v507_v23 }
 0x468   :  { %514 = vrot.lane.b32.xlu1 %v512_v25, %s1588_s0 }
 0x4da   :  { %v515_v26 = vpop.permute.xlu1 %514 }
 0x4db   :  { %v517_v28 = vadd.f32 %v515_v26, %v294_v18  ;;  %v309_v26 = vadd.f32 %v1693_v49, %v1717_v12 }
 0x4dd   :  { %1535 = vtanh.f32 %v517_v28 }
 0x4ea   :  { %v1536_v29 = vpop.eup %1535 }
 0x4eb   :  { %521 = vrot.lane.b32.xlu0 %v1536_v29, %s1589_s3 }
 0x55d   :  { %v522_v31 = vpop.permute.xlu0 %521 }
 0x55e   :  { %v524_v33 = vmul.f32 %v522_v31, %v519_v30 }
 0x560   :  { %v526_v34 = vadd.f32 %v525_v32, %v524_v33 }
 0x562   :  { %528 = vrot.lane.b32.xlu1 %v526_v34, %s1589_s3 }
 0x5d4   :  { %v1729_v35 = vpop.permute.xlu1 %528 }
 0x5d5   :  { %1425 = vmatmul.mubr.msk.f32.vlgmr.msra.gmra.mxu0 %vm197_vm2, %v1729_v35 }
 0x5d6   :  { %1439 = vmatpush3.msra.mxu0 %v1618_v5  ;;  %1446 = vmatprep.mubr.msk.f32.mxu0 %vm1587_vm1, %v1586_v6 }
 0x5d7   :  { %1440 = vmatprep.subr.mxu0 %v1586_v6 }
 0x5d8   :  { %1441 = vmatpush3.msra.mxu0 %v1622_v7 }
 0x5d9   :  { %1442 = vmatprep.subr.mxu0 %v1586_v6 }
 0x5da   :  { %1443 = vmatpush3.msra.mxu0 %v1630_v9 }
 0x5db   :  { %1444 = vmatprep.subr.mxu0 %v1586_v6 }
 0x5dc   :  { %1445 = vmatpush3.msra.mxu0 %v1635_v10 }
 0x5dd   :  { %1460 = vmatprep.subr.mxu0 %v1586_v6 }
 0x695   :  { %v598_v36 = vpop.f32.mrf.mxu0 }
 0x696   :  { %v599_v37 = vadd.f32 %v1671_v27, %v598_v36 }
 0x697   :  { %v1426_v38 = vpop.f32.mrf.mxu0 }
 0x698   :  { %608 = vrot.lane.b32.xlu0 %v599_v37, %s1588_s0  ;;  %v602_v40 = vadd.f32 %v599_v37, %v299_v39 }
 0x69a   :  { %v603_v41 = vmul.f32 0.5, %v602_v40 }
 0x69c   :  { %1537 = vtanh.f32 %v603_v41 }
 0x6a9   :  { %v1538_v42 = vpop.eup %1537 }
 0x6aa   :  { %v605_v43 = vadd.f32 1.0, %v1538_v42 }
 0x6ac   :  { %v606_v44 = vmul.f32 0.5, %v605_v43 }
 0x6ae   :  { %v618_v51 = vsub.f32 1.0, %v606_v44  ;;  %v624_v53 = vmul.f32 %v606_v44, %v526_v34 }
 0x70a   :  { %v609_v45 = vpop.permute.xlu0 %608 }
 0x70b   :  { %v611_v46 = vmul.f32 %v609_v45, %v606_v44 }
 0x70d   :  { %613 = vrot.lane.b32.xlu1 %v611_v46, %s1588_s0 }
 0x77f   :  { %v614_v47 = vpop.permute.xlu1 %613 }
 0x780   :  { %v616_v48 = vadd.f32 %v614_v47, %v299_v39 }
 0x782   :  { %1539 = vtanh.f32 %v616_v48 }
 0x78f   :  { %v1540_v50 = vpop.eup %1539 }
 0x790   :  { %620 = vrot.lane.b32.xlu0 %v1540_v50, %s1589_s3 }
 0x802   :  { %v621_v52 = vpop.permute.xlu0 %620 }
 0x803   :  { %v623_v54 = vmul.f32 %v621_v52, %v618_v51 }
 0x805   :  { %v625_v55 = vadd.f32 %v624_v53, %v623_v54  ;;  %v38_v53 = vld [vmem:[#allocation2 + $0x68] sm:$0xff] }
 0x807   :  { %627 = vrot.lane.b32.xlu1 %v625_v55, %s1589_s3 }
 0x879   :  { %v1749_v56 = vpop.permute.xlu1 %627 }
 0x87a   :  { %1436 = vmatmul.mubr.msk.f32.vlgmr.msra.gmra.mxu1 %vm197_vm2, %v1749_v56 }
 0x87b   :  { %1450 = vmatpush3.msra.mxu1 %v1618_v5  ;;  %1457 = vmatprep.mubr.msk.f32.mxu1 %vm1587_vm1, %v1586_v6 }
 0x87c   :  { %1451 = vmatprep.subr.mxu1 %v1586_v6 }
 0x87d   :  { %1452 = vmatpush3.msra.mxu1 %v1622_v7 }
 0x87e   :  { %1453 = vmatprep.subr.mxu1 %v1586_v6 }
 0x87f   :  { %1454 = vmatpush3.msra.mxu1 %v1630_v9 }
 0x880   :  { %1455 = vmatprep.subr.mxu1 %v1586_v6 }
 0x881   :  { %1456 = vmatpush3.msra.mxu1 %v1635_v10 }
 0x882   :  { %1471 = vmatprep.subr.mxu1 %v1586_v6 }
 0x93a   :  { %v697_v57 = vpop.f32.mrf.mxu1 }
 0x93b   :  { %v698_v58 = vadd.f32 %v1671_v27, %v697_v57 }
 0x93c   :  { %v1437_v59 = vpop.f32.mrf.mxu1 }
 0x93d   :  { %707 = vrot.lane.b32.xlu0 %v698_v58, %s1588_s0  ;;  %v701_v61 = vadd.f32 %v698_v58, %v304_v60 }
 0x93f   :  { %v702_v62 = vmul.f32 0.5, %v701_v61  ;;  %v37_v61 = vld [vmem:[#allocation2 + $0x60] sm:$0xff] }
 0x941   :  { %1541 = vtanh.f32 %v702_v62  ;;  %v36_v62 = vld [vmem:[#allocation2 + $0x58] sm:$0xff] }
 0x94e   :  { %v1542_v63 = vpop.eup %1541 }
 0x94f   :  { %v704_v0 = vadd.f32 1.0, %v1542_v63  ;;  %v35_v63 = vld [vmem:[#allocation2 + $0x50] sm:$0xff] }
 0x951   :  { %v705_v1 = vmul.f32 0.5, %v704_v0 }
 0x953   :  { %v717_v18 = vsub.f32 1.0, %v705_v1  ;;  %v723_v20 = vmul.f32 %v705_v1, %v625_v55 }
 0x9af   :  { %v708_v2 = vpop.permute.xlu0 %707 }
 0x9b0   :  { %v710_v8 = vmul.f32 %v708_v2, %v705_v1  ;;  %v1820_v2 = vld [vmem:[#allocation2 + $0x73] ss:$0 sm:$0xff] }
 0x9b2   :  { %712 = vrot.lane.b32.xlu1 %v710_v8, %s1588_s0 }
 0xa24   :  { %v713_v15 = vpop.permute.xlu1 %712 }
 0xa25   :  { %v715_v16 = vadd.f32 %v713_v15, %v304_v60 }
 0xa27   :  { %1543 = vtanh.f32 %v715_v16 }
 0xa34   :  { %v1544_v17 = vpop.eup %1543 }
 0xa35   :  { %719 = vrot.lane.b32.xlu0 %v1544_v17, %s1589_s3 }
 0xaa7   :  { %v720_v19 = vpop.permute.xlu0 %719 }
 0xaa8   :  { %v722_v4 = vmul.f32 %v720_v19, %v717_v18 }
 0xaaa   :  { %v724_v21 = vadd.f32 %v723_v20, %v722_v4 }
 0xaac   :  { %726 = vrot.lane.b32.xlu1 %v724_v21, %s1589_s3 }
 0xb1e   :  { %v1770_v22 = vpop.permute.xlu1 %726 }
 0xb1f   :  { %1447 = vmatmul.mubr.msk.f32.vlgmr.msra.gmra.mxu0 %vm197_vm2, %v1770_v22 }
 0xb20   :  { %1461 = vmatpush3.msra.mxu0 %v1618_v5  ;;  %1468 = vmatprep.mubr.msk.f32.mxu0 %vm1587_vm1, %v1586_v6 }
 0xb21   :  { %1462 = vmatprep.subr.mxu0 %v1586_v6 }
 0xb22   :  { %1463 = vmatpush3.msra.mxu0 %v1622_v7 }
 0xb23   :  { %1464 = vmatprep.subr.mxu0 %v1586_v6 }
 0xb24   :  { %1465 = vmatpush3.msra.mxu0 %v1630_v9 }
 0xb25   :  { %1466 = vmatprep.subr.mxu0 %v1586_v6 }
 0xb26   :  { %1467 = vmatpush3.msra.mxu0 %v1635_v10 }
 0xb27   :  { %1482 = vmatprep.subr.mxu0 %v38_v53 }
 0xbdf   :  { %v796_v23 = vpop.f32.mrf.mxu0 }
 0xbe0   :  { %v797_v24 = vadd.f32 %v1671_v27, %v796_v23  ;;  %v319_v23 = vadd.f32 %v1693_v49, %v1721_v14 }
 0xbe1   :  { %v1448_v25 = vpop.f32.mrf.mxu0 }
 0xbe2   :  { %806 = vrot.lane.b32.xlu0 %v797_v24, %s1588_s0  ;;  %v800_v28 = vadd.f32 %v797_v24, %v309_v26 }
 0xbe4   :  { %v801_v29 = vmul.f32 0.5, %v800_v28 }
 0xbe6   :  { %1545 = vtanh.f32 %v801_v29 }
 0xbf3   :  { %v1546_v30 = vpop.eup %1545 }
 0xbf4   :  { %v803_v31 = vadd.f32 1.0, %v1546_v30 }
 0xbf6   :  { %v804_v32 = vmul.f32 0.5, %v803_v31 }
 0xbf8   :  { %v816_v39 = vsub.f32 1.0, %v804_v32  ;;  %v822_v41 = vmul.f32 %v804_v32, %v724_v21 }
 0xc54   :  { %v807_v33 = vpop.permute.xlu0 %806 }
 0xc55   :  { %v809_v34 = vmul.f32 %v807_v33, %v804_v32 }
 0xc57   :  { %811 = vrot.lane.b32.xlu1 %v809_v34, %s1588_s0 }
 0xcc9   :  { %v812_v36 = vpop.permute.xlu1 %811 }
 0xcca   :  { %v814_v37 = vadd.f32 %v812_v36, %v309_v26 }
 0xccc   :  { %1547 = vtanh.f32 %v814_v37 }
 0xcd9   :  { %v1548_v38 = vpop.eup %1547 }
 0xcda   :  { %818 = vrot.lane.b32.xlu0 %v1548_v38, %s1589_s3 }
 0xd4c   :  { %v819_v40 = vpop.permute.xlu0 %818 }
 0xd4d   :  { %v821_v12 = vmul.f32 %v819_v40, %v816_v39 }
 0xd4f   :  { %v823_v42 = vadd.f32 %v822_v41, %v821_v12 }
 0xd51   :  { %825 = vrot.lane.b32.xlu1 %v823_v42, %s1589_s3 }
 0xdc3   :  { %v826_v43 = vpop.permute.xlu1 %825 }
 0xdc4   :  { %1458 = vmatmul.mubr.msk.f32.vlgmr.msra.gmra.mxu1 %vm197_vm2, %v826_v43 }
 0xdc5   :  { %1472 = vmatpush3.msra.mxu1 %v1618_v5  ;;  %1479 = vmatprep.mubr.msk.f32.mxu1 %vm1587_vm1, %v1586_v6  ;;  %v314_v5 = vadd.f32 %v1715_v11, %v1693_v49 }
 0xdc6   :  { %1473 = vmatprep.subr.mxu1 %v1586_v6 }
 0xdc7   :  { %1474 = vmatpush3.msra.mxu1 %v1622_v7 }
 0xdc8   :  { %1475 = vmatprep.subr.mxu1 %v1586_v6 }
 0xdc9   :  { %1476 = vmatpush3.msra.mxu1 %v1630_v9 }
 0xdca   :  { %1477 = vmatprep.subr.mxu1 %v1586_v6 }
 0xdcb   :  { %1478 = vmatpush3.msra.mxu1 %v1635_v10 }
 0xe84   :  { %v895_v44 = vpop.f32.mrf.mxu1 }
 0xe85   :  { %v896_v45 = vadd.f32 %v1671_v27, %v895_v44 }
 0xe86   :  { %v1459_v46 = vpop.f32.mrf.mxu1 }
 0xe87   :  { %905 = vrot.lane.b32.xlu0 %v896_v45, %s1588_s0  ;;  %v899_v47 = vadd.f32 %v896_v45, %v314_v5 }
 0xe89   :  { %v900_v48 = vmul.f32 0.5, %v899_v47 }
 0xe8b   :  { %1549 = vtanh.f32 %v900_v48 }
 0xe98   :  { %v1550_v7 = vpop.eup %1549 }
 0xe99   :  { %v902_v50 = vadd.f32 1.0, %v1550_v7 }
 0xe9b   :  { %v903_v51 = vmul.f32 0.5, %v902_v50 }
 0xe9d   :  { %v915_v55 = vsub.f32 1.0, %v903_v51  ;;  %v921_v57 = vmul.f32 %v903_v51, %v823_v42 }
 0xef9   :  { %v906_v9 = vpop.permute.xlu0 %905 }
 0xefa   :  { %v908_v52 = vmul.f32 %v906_v9, %v903_v51 }
 0xefc   :  { %910 = vrot.lane.b32.xlu1 %v908_v52, %s1588_s0 }
 0xf6e   :  { %v911_v6 = vpop.permute.xlu1 %910 }
 0xf6f   :  { %v913_v10 = vadd.f32 %v911_v6, %v314_v5 }
 0xf71   :  { %1551 = vtanh.f32 %v913_v10 }
 0xf7e   :  { %v1552_v54 = vpop.eup %1551 }
 0xf7f   :  { %917 = vrot.lane.b32.xlu0 %v1552_v54, %s1589_s3 }
 0xff1   :  { %v918_v11 = vpop.permute.xlu0 %917 }
 0xff2   :  { %v920_v58 = vmul.f32 %v918_v11, %v915_v55 }
 0xff4   :  { %v922_v59 = vadd.f32 %v921_v57, %v920_v58 }
 0xff6   :  { %924 = vrot.lane.b32.xlu1 %v922_v59, %s1589_s3 }
0x1068   :  { %v925_v60 = vpop.permute.xlu1 %924 }
0x1069   :  { %1469 = vmatmul.mubr.msk.f32.vlgmr.msra.gmra.mxu0 %vm197_vm2, %v925_v60 }
0x106a   :  { %1483 = vmatpush3.msra.mxu0 %v38_v53  ;;  %1490 = vmatprep.mubr.msk.f32.mxu0 %vm197_vm2, %v1699_v3 }
0x106b   :  { %1484 = vmatprep.subr.mxu0 %v37_v61 }
0x106c   :  { %1485 = vmatpush3.msra.mxu0 %v37_v61 }
0x106d   :  { %1486 = vmatprep.subr.mxu0 %v36_v62 }
0x106e   :  { %1487 = vmatpush3.msra.mxu0 %v36_v62 }
0x106f   :  { %1488 = vmatprep.subr.mxu0 %v35_v63 }
0x1070   :  { %1489 = vmatpush3.msra.mxu0 %v35_v63 }
0x1071   :  { %1491 = vmatmul.mubr.msk.f32.vlgmr.msra.gmra.mxu0 %vm197_vm2, %v1729_v35 }
0x1072   :  { %1493 = vmatprep.mubr.msk.f32.mxu0 %vm197_vm2, %v1749_v56 }
0x1075   :  { %1494 = vmatmul.mubr.msk.f32.gmra.mxu0 %vm197_vm2, %v1770_v22 }
0x1076   :  { %1496 = vmatprep.mubr.msk.f32.mxu0 %vm197_vm2, %v826_v43  ;;  %v324_v43 = vadd.f32 %v1719_v13, %v1693_v49 }
0x1079   :  { %1497 = vmatmul.mubr.msk.f32.gmra.mxu0 %vm197_vm2, %v925_v60 }
0x1129   :  { %v994_v3 = vpop.f32.mrf.mxu0 }
0x112a   :  { %v995_v0 = vadd.f32 %v1671_v27, %v994_v3 }
0x112b   :  { %v1470_v1 = vpop.f32.mrf.mxu0 }
0x112c   :  { %1004 = vrot.lane.b32.xlu0 %v995_v0, %s1588_s0  ;;  %v998_v24 = vadd.f32 %v995_v0, %v319_v23 }
0x112e   :  { %v999_v25 = vmul.f32 0.5, %v998_v24 }
0x1130   :  { %1553 = vtanh.f32 %v999_v25 }
0x1131   :  { %v1492_v8 = vpop.f32.mrf.mxu0 }
0x1132   :  { %v1202_v35 = vadd.f32 %v1492_v8, %v1820_v2 }
0x1133   :  { %v1196_v56 = vpop.f32.mrf.mxu0 }
0x1134   :  { %1237 = vst.msk [vmem:[%s1879_s2 + $0x8] sm:$0xff] %vm1235_vm3, %v1202_v35  ;;  %v1197_v15 = vadd.f32 %v1820_v2, %v1196_v56 }
0x1135   :  { %v1495_v16 = vpop.f32.mrf.mxu0 }
0x1136   :  { %1236 = vst.msk [vmem:[%s1879_s2] sm:$0xff] %vm1235_vm3, %v1197_v15  ;;  %v1212_v17 = vadd.f32 %v1495_v16, %v1820_v2 }
0x1137   :  { %v1206_v18 = vpop.f32.mrf.mxu0 }
0x1138   :  { %1239 = vst.msk [vmem:[%s1879_s2 + $0x18] sm:$0xff] %vm1235_vm3, %v1212_v17  ;;  %v1207_v19 = vadd.f32 %v1820_v2, %v1206_v18 }
0x1139   :  { %v1498_v20 = vpop.f32.mrf.mxu0 }
0x113a   :  { %1238 = vst.msk [vmem:[%s1879_s2 + $0x10] sm:$0xff] %vm1235_vm3, %v1207_v19  ;;  %v1222_v4 = vadd.f32 %v1498_v20, %v1820_v2 }
0x113b   :  { %v1216_v21 = vpop.f32.mrf.mxu0 }
0x113c   :  { %1241 = vst.msk [vmem:[%s1879_s2 + $0x28] sm:$0xff] %vm1235_vm3, %v1222_v4  ;;  %v1217_v22 = vadd.f32 %v1820_v2, %v1216_v21 }
0x113d   :  { %v1554_v26 = vpop.eup %1553 }
0x113e   :  { %1240 = vst.msk [vmem:[%s1879_s2 + $0x20] sm:$0xff] %vm1235_vm3, %v1217_v22  ;;  %v1001_v28 = vadd.f32 1.0, %v1554_v26 }
0x1140   :  { %v1002_v29 = vmul.f32 0.5, %v1001_v28 }
0x1142   :  { %v1014_v36 = vsub.f32 1.0, %v1002_v29  ;;  %v1020_v38 = vmul.f32 %v1002_v29, %v922_v59 }
0x119e   :  { %v1005_v30 = vpop.permute.xlu0 %1004 }
0x119f   :  { %v1007_v31 = vmul.f32 %v1005_v30, %v1002_v29 }
0x11a1   :  { %1009 = vrot.lane.b32.xlu1 %v1007_v31, %s1588_s0 }
0x1213   :  { %v1010_v32 = vpop.permute.xlu1 %1009 }
0x1214   :  { %v1012_v33 = vadd.f32 %v1010_v32, %v319_v23 }
0x1216   :  { %1555 = vtanh.f32 %v1012_v33 }
0x1223   :  { %v1556_v34 = vpop.eup %1555 }
0x1224   :  { %1016 = vrot.lane.b32.xlu0 %v1556_v34, %s1589_s3 }
0x1296   :  { %v1017_v37 = vpop.permute.xlu0 %1016 }
0x1297   :  { %v1019_v14 = vmul.f32 %v1017_v37, %v1014_v36 }
0x1299   :  { %v1021_v39 = vadd.f32 %v1020_v38, %v1019_v14 }
0x129b   :  { %1023 = vrot.lane.b32.xlu1 %v1021_v39, %s1589_s3 }
0x130d   :  { %v1024_v40 = vpop.permute.xlu1 %1023 }
0x130e   :  { %1480 = vmatmul.mubr.msk.f32.vlgmr.msra.gmra.mxu1 %vm197_vm2, %v1024_v40  ;;  %1499 = vmatprep.mubr.msk.f32.mxu0 %vm197_vm2, %v1024_v40 }
0x13ce   :  { %v1093_v41 = vpop.f32.mrf.mxu1 }
0x13cf   :  { %v1094_v12 = vadd.f32 %v1671_v27, %v1093_v41 }
0x13d0   :  { %v1481_v42 = vpop.f32.mrf.mxu1 }
0x13d1   :  { %1103 = vrot.lane.b32.xlu0 %v1094_v12, %s1588_s0  ;;  %v1097_v44 = vadd.f32 %v1094_v12, %v324_v43 }
0x13d3   :  { %v1098_v45 = vmul.f32 0.5, %v1097_v44 }
0x13d5   :  { %1557 = vtanh.f32 %v1098_v45 }
0x13e2   :  { %v1558_v46 = vpop.eup %1557 }
0x13e3   :  { %v1100_v5 = vadd.f32 1.0, %v1558_v46 }
0x13e5   :  { %v1101_v47 = vmul.f32 0.5, %v1100_v5 }
0x13e7   :  { %v1113_v9 = vsub.f32 1.0, %v1101_v47  ;;  %v1119_v6 = vmul.f32 %v1101_v47, %v1021_v39 }
0x1443   :  { %v1104_v48 = vpop.permute.xlu0 %1103 }
0x1444   :  { %v1106_v7 = vmul.f32 %v1104_v48, %v1101_v47 }
0x1446   :  { %1108 = vrot.lane.b32.xlu1 %v1106_v7, %s1588_s0 }
0x14b8   :  { %v1109_v50 = vpop.permute.xlu1 %1108 }
0x14b9   :  { %v1111_v51 = vadd.f32 %v1109_v50, %v324_v43 }
0x14bb   :  { %1559 = vtanh.f32 %v1111_v51 }
0x14c8   :  { %v1560_v27 = vpop.eup %1559 }
0x14c9   :  { %1115 = vrot.lane.b32.xlu0 %v1560_v27, %s1589_s3 }
0x153b   :  { %v1116_v52 = vpop.permute.xlu0 %1115 }
0x153c   :  { %v1118_v49 = vmul.f32 %v1116_v52, %v1113_v9 }
0x153e   :  { %v1120_v13 = vadd.f32 %v1119_v6, %v1118_v49 }
0x1540   :  { %1126 = vrot.lane.b32.xlu1 %v1120_v13, %s1589_s3 }
0x15b2   :  { %v1127_v10 = vpop.permute.xlu1 %1126 }
0x15b3   :  { %1500 = vmatmul.mubr.msk.f32.gmra.mxu0 %vm197_vm2, %v1127_v10 }
0x1673   :  { %v1501_v53 = vpop.f32.mrf.mxu0 }
0x1674   :  { %v1232_v54 = vadd.f32 %v1501_v53, %v1820_v2 }
0x1675   :  { %v1226_v55 = vpop.f32.mrf.mxu0 }
0x1676   :  { %1243 = vst.msk [vmem:[%s1879_s2 + $0x38] sm:$0xff] %vm1235_vm3, %v1232_v54  ;;  %v1227_v11 = vadd.f32 %v1820_v2, %v1226_v55 }
0x1678   :  { %1242 = vst.msk [vmem:[%s1879_s2 + $0x30] sm:$0xff] %vm1235_vm3, %v1227_v11 }
0x1679   :  { %1248 = vsyncpa [#allocation3], 1 }

</bundles_post_ra>
